<compile_context>
chip_gen: v7x
topology: tpu7x:2x2x1
jax: 0.10.0
libtpu: 0.0.40
codegen_flags: <defaults>
</compile_context>

<pallas_src>
import functools

import jax
import jax.numpy as jnp
from jax.experimental import pallas as pl
from jax.experimental.pallas import tpu as pltpu


def _combined_loss_partials_kernel(pred_ref, tgt_ref, out_ref, *,
                                   rows_valid, needs_mask):
    # pred_ref/tgt_ref: (tile_rows, 128) block of the flattened inputs.
    # out_ref: (1, 2, 8, 128) per-block partial sums -> [sum|d|, sum d^2].
    d = pred_ref[...].astype(jnp.float32) - tgt_ref[...].astype(jnp.float32)
    tile_rows = d.shape[0]

    if needs_mask:
        # Global row index; rows at/after `rows_valid` are out-of-bounds
        # garbage from the partial edge block and must not contribute.
        row_ids = jax.lax.broadcasted_iota(jnp.int32, d.shape, 0)
        row_ids = row_ids + pl.program_id(0) * tile_rows
        d = jnp.where(row_ids < rows_valid, d, 0.0)

    a = jnp.abs(d)
    s = d * d
    # Layout-preserving reshape (whole (8,128) vregs stay intact): reduce only
    # across vregs (VPU adds); the cross-lane collapse happens once, in JAX.
    a_part = jnp.sum(a.reshape(-1, 8, 128), axis=0)   # (8, 128)
    s_part = jnp.sum(s.reshape(-1, 8, 128), axis=0)   # (8, 128)
    out_ref[0, 0] = a_part
    out_ref[0, 1] = s_part


def combined_loss(pred, target, mae_weight=0.7, mse_weight=0.3,
                  tile_rows=2048):
    """0.7 * mean|pred-target| + 0.3 * mean((pred-target)^2), Pallas on TPU."""
    assert pred.shape == target.shape, "pred/target shape mismatch"
    n = pred.size
    lane = 128

    p = jnp.ravel(pred)
    t = jnp.ravel(target)

    rows = -(-n // lane)
    padded = rows * lane
    if padded != n:
        # TODO(synk): tail-only handling would avoid this full-array copy; it
        # only triggers when numel % 128 != 0 (zero pad -> contributes 0).
        p = jnp.pad(p, (0, padded - n))
        t = jnp.pad(t, (0, padded - n))
    if rows < 8:
        # Degenerate tiny input: pad rows up to one (8, 128) tile (tiny copy).
        extra = 8 - rows
        p = jnp.pad(p, (0, extra * lane))
        t = jnp.pad(t, (0, extra * lane))
        rows = 8

    p2 = p.reshape(rows, lane)
    t2 = t.reshape(rows, lane)

    # Tile rows: multiple of 8, never larger than the array's row count (so
    # only the classic partial *edge* block can occur), default 2048 rows
    # (1 MiB / input block in f32).
    tr = min(int(tile_rows), (rows // 8) * 8)
    tr = max(8, (tr // 8) * 8)
    num_blocks = -(-rows // tr)
    needs_mask = (num_blocks * tr != rows)

    kernel = functools.partial(
        _combined_loss_partials_kernel,
        rows_valid=rows,
        needs_mask=needs_mask,
    )

    itemsize = jnp.dtype(pred.dtype).itemsize
    out_bytes = num_blocks * 2 * 8 * lane * 4
    cost = pl.CostEstimate(
        flops=4 * n,
        transcendentals=0,
        bytes_accessed=2 * n * itemsize + out_bytes,
    )

    partials = pl.pallas_call(
        kernel,
        out_shape=jax.ShapeDtypeStruct((num_blocks, 2, 8, lane), jnp.float32),
        grid_spec=pltpu.PrefetchScalarGridSpec(
            num_scalar_prefetch=0,
            grid=(num_blocks,),
            in_specs=[
                pl.BlockSpec((tr, lane), lambda i: (i, 0)),
                pl.BlockSpec((tr, lane), lambda i: (i, 0)),
            ],
            out_specs=pl.BlockSpec((1, 2, 8, lane), lambda i: (i, 0, 0, 0)),
        ),
        compiler_params=pltpu.CompilerParams(
            # No carried accumulator -> the grid axis is truly parallel; on
            # v7x both TensorCores stream HBM. (Buffered(3) could be swept on
            # v7x if DMA ever shows up exposed; default double-buffer is fine.)
            dimension_semantics=("parallel",),
        ),
        cost_estimate=cost,
    )(p2, t2)

    sum_abs = jnp.sum(partials[:, 0], dtype=jnp.float32)
    sum_sq = jnp.sum(partials[:, 1], dtype=jnp.float32)
    inv_n = 1.0 / float(n)
    return (mae_weight * inv_n) * sum_abs + (mse_weight * inv_n) * sum_sq


if __name__ == "__main__":
    key = jax.random.PRNGKey(0)
    k1, k2, k3, k4 = jax.random.split(key, 4)

    # Primary check: small shape consistent with scFoundation usage.
    pred = jax.random.normal(k1, (2, 4, 16, 16), dtype=jnp.float32)
    target = jax.random.normal(k2, (2, 4, 16, 16), dtype=jnp.float32)
    loss = combined_loss(pred, target)
    jax.block_until_ready(loss)
    ref = 0.7 * jnp.mean(jnp.abs(pred - target)) + 0.3 * jnp.mean(
        (pred - target) ** 2)
    assert jnp.allclose(loss, ref, rtol=1e-5, atol=1e-6), (loss, ref)

    # Secondary check: ragged shape exercising the tail-pad / partial-block
    # masking path (numel not a multiple of 128, rows not a multiple of tile).
    pred2 = jax.random.normal(k3, (3, 5, 257), dtype=jnp.float32)
    target2 = jax.random.normal(k4, (3, 5, 257), dtype=jnp.float32)
    loss2 = combined_loss(pred2, target2)
    jax.block_until_ready(loss2)
    ref2 = 0.7 * jnp.mean(jnp.abs(pred2 - target2)) + 0.3 * jnp.mean(
        (pred2 - target2) ** 2)
    assert jnp.allclose(loss2, ref2, rtol=1e-5, atol=1e-6), (loss2, ref2)

    print("KERNEL_OK")
</pallas_src>

<mosaic_0001>
module attributes {stable_mosaic.version = 11 : i64} {
  func.func @_combined_loss_partials_kernel(%arg0: i32, %arg1: memref<16x128xf32, #tpu.memory_space<vmem>>, %arg2: memref<16x128xf32, #tpu.memory_space<vmem>>, %arg3: memref<1x2x8x128xf32, #tpu.memory_space<vmem>>) attributes {dimension_semantics = [#tpu.dimension_semantics<parallel>], iteration_bounds = array<i64: 1>, scalar_prefetch = 0 : i64, scratch_operands = 0 : i64, tpu.core_type = #tpu.core_type<tc>, window_params = [{transform_indices = @transform_0, window_bounds = array<i64: 16, 128>}, {transform_indices = @transform_1, window_bounds = array<i64: 16, 128>}, {transform_indices = @transform_2, window_bounds = array<i64: 1, 2, 8, 128>}]} {
    %c0 = arith.constant 0 : index
    %c0_0 = arith.constant 0 : index
    %0 = vector.load %arg1[%c0, %c0_0] : memref<16x128xf32, #tpu.memory_space<vmem>>, vector<16x128xf32>
    %c0_1 = arith.constant 0 : index
    %c0_2 = arith.constant 0 : index
    %1 = vector.load %arg2[%c0_1, %c0_2] : memref<16x128xf32, #tpu.memory_space<vmem>>, vector<16x128xf32>
    %2 = arith.subf %0, %1 : vector<16x128xf32>
    %3 = math.absf %2 : vector<16x128xf32>
    %4 = arith.mulf %2, %2 : vector<16x128xf32>
    %5 = vector.shape_cast %3 : vector<16x128xf32> to vector<2x8x128xf32>
    %cst = arith.constant dense<0.000000e+00> : vector<8x128xf32>
    %6 = vector.multi_reduction <add>, %5, %cst [0] : vector<2x8x128xf32> to vector<8x128xf32>
    %7 = vector.shape_cast %4 : vector<16x128xf32> to vector<2x8x128xf32>
    %cst_3 = arith.constant dense<0.000000e+00> : vector<8x128xf32>
    %8 = vector.multi_reduction <add>, %7, %cst_3 [0] : vector<2x8x128xf32> to vector<8x128xf32>
    %c0_4 = arith.constant 0 : index
    %c0_5 = arith.constant 0 : index
    %c0_6 = arith.constant 0 : index
    %c0_7 = arith.constant 0 : index
    %9 = vector.load %arg3[%c0_4, %c0_5, %c0_6, %c0_7] : memref<1x2x8x128xf32, #tpu.memory_space<vmem>>, vector<1x1x8x128xf32>
    %10 = vector.shape_cast %9 : vector<1x1x8x128xf32> to vector<8x128xf32>
    %11 = vector.shape_cast %6 : vector<8x128xf32> to vector<1x1x8x128xf32>
    tpu.vector_store %arg3[%c0_4, %c0_5, %c0_6, %c0_7], %11 {strides = array<i32>} : memref<1x2x8x128xf32, #tpu.memory_space<vmem>>, vector<1x1x8x128xf32>,
    %c0_8 = arith.constant 0 : index
    %c1 = arith.constant 1 : index
    %c0_9 = arith.constant 0 : index
    %c0_10 = arith.constant 0 : index
    %12 = vector.load %arg3[%c0_8, %c1, %c0_9, %c0_10] : memref<1x2x8x128xf32, #tpu.memory_space<vmem>>, vector<1x1x8x128xf32>
    %13 = vector.shape_cast %12 : vector<1x1x8x128xf32> to vector<8x128xf32>
    %14 = vector.shape_cast %8 : vector<8x128xf32> to vector<1x1x8x128xf32>
    tpu.vector_store %arg3[%c0_8, %c1, %c0_9, %c0_10], %14 {strides = array<i32>} : memref<1x2x8x128xf32, #tpu.memory_space<vmem>>, vector<1x1x8x128xf32>,
    return
  }
  func.func @transform_0(%arg0: i32) -> (i32, i32) {
    %c0_i32 = arith.constant 0 : i32
    %c0_i32_0 = arith.constant 0 : i32
    return %arg0, %c0_i32 : i32, i32
  }
  func.func @transform_1(%arg0: i32) -> (i32, i32) {
    %c0_i32 = arith.constant 0 : i32
    %c0_i32_0 = arith.constant 0 : i32
    return %arg0, %c0_i32 : i32, i32
  }
  func.func @transform_2(%arg0: i32) -> (i32, i32, i32, i32) {
    %c0_i32 = arith.constant 0 : i32
    %c0_i32_0 = arith.constant 0 : i32
    %c0_i32_1 = arith.constant 0 : i32
    %c0_i32_2 = arith.constant 0 : i32
    return %arg0, %c0_i32, %c0_i32_0, %c0_i32_1 : i32, i32, i32, i32
  }
}

</mosaic_0001>

<bundles_post_ra>
// kernel: tpu_custom_call.1
= control target key start
LH: loop header
LB: loop body
LE: loop exit
PB: predicated region body
PF: predicated region fallthrough
CT: control target
= control target key end

     0   :  { %7 = vsyncpa [#allocation3], 0  ;;  %s215_s0 = inlined_call_operand.hbm [shape: f32[16,128], index: 0, kind: input, shape index: {}]   ;;  %s216_s1 = inlined_call_operand.hbm [shape: f32[16,128], index: 1, kind: input, shape index: {}]   ;;  %s217_s2 = inlined_call_operand.hbm [shape: f32[1,2,8,128], index: 2, kind: output, shape index: {}]  }
   0x1   :  { %8 = vsyncpa [#allocation6], 0 }
   0x2   :  { %9 = vsyncpa [#allocation4], 0  ;;  %s150_s9 = smov [#allocation2]   ;;  %s78_s13 = scalar_lea.hbm %s215_s0, 256 }
   0x3   :  { %s15_s10 = sshll.u32 %s150_s9, 4  ;;  %p79_p0 = scmp.ne.s32.totalorder %s215_s0, %s78_s13  ;;  %s16_s10 = int_to_ptr.vmem [resolvable:$true] %s15_s10 }
   0x4   :  { %p82_p1 = scmp.lt.u32.totalorder %s78_s13, %s215_s0 }
   0x6   :  { %p84_p2 = pnand %p82_p1, %p79_p0 }
   0x8   :  { %87 = shalt.err (!%p84_p2)
}
   0x9   :  { %s88_s18 = scalar_lea.vmem %s16_s10, 256  ;;  %p93_p4 = scmp.lt.s32.totalorder %s16_s10, %s16_s10 }
   0xa   :  { %p89_p3 = scmp.ne.s32.totalorder %s16_s10, %s88_s18  ;;  %p94_p5 = scmp.lt.s32.totalorder %s88_s18, %s88_s18 }
   0xc   :  { %p95_p6 = por %p94_p5, %p93_p4 }
   0xe   :  { %p96_p7 = pnand %p95_p6, %p89_p3 }
  0x10   :  { %99 = shalt.err (!%p96_p7)
}
  0x11   :  { %s151_s19 = smov 128   ;;  %s152_s20 = smov 8  }
  0x12   :  { %21 = dma.hbm_to_vmem [thread:$0]  %s215_s0, 256, %s16_s10, [#allocation3], %s151_s19, %s151_s19, %s152_s20  }
  0x13   :  { %s153_s23 = smov [#allocation5]   ;;  %s100_s27 = scalar_lea.hbm %s216_s1, 256 }
  0x14   :  { %s27_s24 = sshll.u32 %s153_s23, 4  ;;  %p101_p8 = scmp.ne.s32.totalorder %s216_s1, %s100_s27  ;;  %s28_s24 = int_to_ptr.vmem [resolvable:$true] %s27_s24 }
  0x15   :  { %p104_p9 = scmp.lt.u32.totalorder %s100_s27, %s216_s1 }
  0x17   :  { %p106_p10 = pnand %p104_p9, %p101_p8 }
  0x19   :  { %109 = shalt.err (!%p106_p10)
}
  0x1a   :  { %s110_s4 = scalar_lea.vmem %s28_s24, 256  ;;  %p115_p12 = scmp.lt.s32.totalorder %s28_s24, %s28_s24 }
  0x1b   :  { %p111_p11 = scmp.ne.s32.totalorder %s28_s24, %s110_s4  ;;  %p116_p13 = scmp.lt.s32.totalorder %s110_s4, %s110_s4 }
  0x1d   :  { %p117_p0 = por %p116_p13, %p115_p12 }
  0x1f   :  { %p118_p1 = pnand %p117_p0, %p111_p11 }
  0x21   :  { %121 = shalt.err (!%p118_p1)
}
  0x22   :  { %33 = dma.hbm_to_vmem [thread:$0]  %s216_s1, 256, %s28_s24, [#allocation6], %s151_s19, %s151_s19, %s152_s20  }
  0x23   :  { %144 = dma.done.wait [#allocation3], 256  }
  0x24   :  { %145 = vsyncadd [#allocation3], 4294967040 }
  0x25   :  { %146 = dma.done.wait [#allocation6], 256  }
  0x26   :  { %147 = vsyncadd [#allocation6], 4294967040  ;;  %v40_v0 = vld [vmem:[#allocation2] sm:$0xff]  ;;  %v41_v1 = vld [vmem:[#allocation2 + $0x8] sm:$0xff]  ;;  %s154_s6 = smov [#allocation7]  }
  0x27   :  { %v42_v2 = vld [vmem:[#allocation5] sm:$0xff]  ;;  %v43_v3 = vld [vmem:[#allocation5 + $0x8] sm:$0xff]  ;;  %s60_s7 = sshll.u32 %s154_s6, 4  ;;  %s61_s7 = int_to_ptr.vmem [resolvable:$true] %s60_s7 }
  0x28   :  { %v44_v4 = vsub.f32 %v40_v0, %v42_v2  ;;  %v45_v5 = vsub.f32 %v41_v1, %v43_v3  ;;  %s122_s1 = scalar_lea.vmem %s61_s7, 256  ;;  %p127_p3 = scmp.lt.s32.totalorder %s61_s7, %s61_s7 }
  0x29   :  { %p123_p2 = scmp.ne.s32.totalorder %s61_s7, %s122_s1  ;;  %p128_p4 = scmp.lt.s32.totalorder %s122_s1, %s122_s1 }
  0x2a   :  { %v46_v6 = vand.u32 2147483647, %v44_v4  ;;  %v48_v7 = vmul.f32 %v44_v4, %v44_v4  ;;  %v47_v8 = vand.u32 2147483647, %v45_v5  ;;  %v49_v9 = vmul.f32 %v45_v5, %v45_v5 }
  0x2b   :  { %p129_p5 = por %p128_p4, %p127_p3 }
  0x2c   :  { %v50_v10 = vadd.f32 %v47_v8, %v46_v6  ;;  %v51_v11 = vadd.f32 %v49_v9, %v48_v7 }
  0x2d   :  { %p130_p6 = pnand %p129_p5, %p123_p2 }
  0x2e   :  { %52 = vst [vmem:[#allocation7] sm:$0xff] %v50_v10  ;;  %54 = vst [vmem:[#allocation7 + $0x8] sm:$0xff] %v51_v11 }
  0x2f   :  { %133 = shalt.err (!%p130_p6)
}
  0x30   :  { %s134_s10 = scalar_lea.hbm %s217_s2, 256 }
  0x31   :  { %p135_p7 = scmp.ne.s32.totalorder %s217_s2, %s134_s10  ;;  %p138_p8 = scmp.lt.u32.totalorder %s134_s10, %s217_s2 }
  0x33   :  { %p140_p9 = pnand %p138_p8, %p135_p7 }
  0x35   :  { %143 = shalt.err (!%p140_p9)
}
  0x36   :  { %66 = dma.vmem_to_hbm [thread:$0]  %s61_s7, 256, %s217_s2, [#allocation4], %s151_s19, %s151_s19, %s152_s20  }
  0x37   :  { %148 = dma.done.wait [#allocation4], 256  }
  0x38   :  { %149 = vsyncadd [#allocation4], 4294967040 }
  0x39   :  { %70 = vsyncpa [#allocation3], 1 }
  0x3a   :  { %71 = vsyncpa [#allocation6], 1 }
  0x3b   :  { %72 = vsyncpa [#allocation4], 1 }

</bundles_post_ra>
